<compile_context>
chip_gen: v5e
topology: v5e:2x2
jax: 0.10.0
libtpu: 0.0.40
codegen_flags: <defaults>
</compile_context>

<pallas_src>
import numpy as np
import jax
import jax.numpy as jnp
from jax.experimental import pallas as pl
from jax.experimental.pallas import tpu as pltpu


def _make_fused_kernel(channels, T, bb, ncw_in_kernel, mxu_bf16, fma_max_cin, fma_max_cout):
    """Build the fused multi-layer kernel body (layer loop unrolled at trace time)."""
    L = len(channels)
    cins = [1] + list(channels[:-1])
    c_last = channels[-1]
    M = bb * T
    mm_dtype = jnp.bfloat16 if mxu_bf16 else jnp.float32

    def kernel(x_ref, *refs):
        # refs = (w0_0, w1_0, b_0, ..., w0_{L-1}, w1_{L-1}, b_{L-1}, y_ref)
        y_ref = refs[-1]
        h = x_ref[...].reshape(M, 1)                        # (M, 1) channels-last, M = bb*T

        # Causal mask hoisted out of the layer loop (single iota/modulo, reused by broadcast).
        t_idx = jax.lax.broadcasted_iota(jnp.int32, (M, 1), 0)
        is_t0 = (t_idx == 0) if bb == 1 else ((t_idx % T) == 0)

        for l in range(L):
            w0_ref, w1_ref, b_ref = refs[3 * l], refs[3 * l + 1], refs[3 * l + 2]
            cin, cout = cins[l], channels[l]
            # h_prev[r] = h[r-1]; wrapped rows land only on (t % T)==0 rows, masked below.
            h_prev = pltpu.roll(h, shift=1, axis=0)

            if cin == 1 or (cin <= fma_max_cin and cout <= fma_max_cout):
                # Tiny layer: unrolled broadcast FMA on the VPU; a (M,2*cin)@(2*cin,cout)
                # matmul with K<=16, N<=32 would be almost entirely MXU padding.
                w0, w1 = w0_ref[...], w1_ref[...]           # (cin, cout) each
                y = b_ref[...] + h_prev[:, 0:1] * w0[0:1, :] + h[:, 0:1] * w1[0:1, :]
                for c in range(1, cin):
                    y = y + h_prev[:, c:c + 1] * w0[c:c + 1, :] + h[:, c:c + 1] * w1[c:c + 1, :]
            else:
                # Two MXU pushes against the packed tap halves (no lane-axis concat of the
                # activation).  bf16 operands, f32 accumulation.
                y = (jnp.dot(h_prev.astype(mm_dtype), w0_ref[...].astype(mm_dtype),
                             preferred_element_type=jnp.float32)
                     + jnp.dot(h.astype(mm_dtype), w1_ref[...].astype(mm_dtype),
                               preferred_element_type=jnp.float32)
                     + b_ref[...])

            # Causal left-pad: every layer's output at t == 0 is exactly 0.
            h = jnp.where(is_t0, 0.0, y)

        y3 = h.reshape(bb, T, c_last)
        if ncw_in_kernel:
            # T multiple of 128: one bulk relayout + one lane-dense store (lanes = T).
            y_ref[...] = jnp.swapaxes(y3, 1, 2).astype(y_ref.dtype)
        else:
            # NTC store, no in-kernel relayout; NCW permute happens once outside the kernel.
            y_ref[...] = y3.astype(y_ref.dtype)

    return kernel


def pack_params(params):
    """Pack per-layer (W:(Cout,Cin,2), b:(Cout,)) into (w0:(Cin,Cout), w1:(Cin,Cout), b:(1,Cout))
    f32, ONCE (no per-call transposes, no concatenated tap axis)."""
    packed = []
    for w, b in params:
        cout = w.shape[0]
        w0 = jnp.asarray(w[:, :, 0].T, jnp.float32)         # tap at t-1
        w1 = jnp.asarray(w[:, :, 1].T, jnp.float32)         # tap at t
        bp = jnp.asarray(b, jnp.float32).reshape(1, cout)
        packed.append((w0, w1, bp))
    return packed


def _select_batch_tile(B, requested):
    if requested is not None:
        if requested >= 1 and B % requested == 0:
            return requested
        print(f"[causal_conv] WARNING: batch_tile={requested} does not divide B={B}; "
              f"auto-selecting instead.")
    if B <= 1:
        return max(B, 1)
    # Largest divisor of B that still leaves >= 2 grid steps: both v7x TensorCores get work,
    # while each step's matmul M-dim (bb*T) stays as large as possible.
    for d in range(B // 2, 0, -1):
        if B % d == 0:
            return d
    return 1


def causal_conv_forward(x, packed_params, *, batch_tile=None, mxu_bf16=True,
                        fma_max_cin=8, fma_max_cout=32, vmem_limit_bytes=None):
    """x: (B, T) f32 -> (B, C_last, T) f32 (PyTorch NCW output). One fused pallas_call."""
    B, T = x.shape
    bb = _select_batch_tile(B, batch_tile)
    channels = [w1.shape[1] for _, w1, _ in packed_params]
    c_last = channels[-1]
    ncw_in_kernel = (T % 128 == 0)                          # lane-dense NCW store possible

    x3 = x.astype(jnp.float32)[:, :, None]                  # (B, T, 1) channels-last

    kernel = _make_fused_kernel(channels, T, bb, ncw_in_kernel, mxu_bf16,
                                fma_max_cin, fma_max_cout)

    in_specs = [pl.BlockSpec((bb, T, 1), lambda i: (i, 0, 0))]
    flat_params = []
    for w0, w1, bp in packed_params:
        for arr in (w0, w1, bp):
            in_specs.append(pl.BlockSpec(arr.shape, lambda i: (0, 0)))
            flat_params.append(arr)

    if ncw_in_kernel:
        out_shape = jax.ShapeDtypeStruct((B, c_last, T), jnp.float32)
        out_spec = pl.BlockSpec((bb, c_last, T), lambda i: (i, 0, 0))
    else:
        out_shape = jax.ShapeDtypeStruct((B, T, c_last), jnp.float32)
        out_spec = pl.BlockSpec((bb, T, c_last), lambda i: (i, 0, 0))

    # vmem_limit_bytes is exposed for future T-tiled configs (size for v7x's 64 MiB physical
    # VMEM, half of v5e/v6e); unnecessary at these shapes so left unset by default.
    compiler_params = pltpu.CompilerParams(dimension_semantics=("parallel",),
                                           vmem_limit_bytes=vmem_limit_bytes)

    out = pl.pallas_call(
        kernel,
        out_shape=out_shape,
        grid=(B // bb,),
        in_specs=in_specs,
        out_specs=out_spec,
        compiler_params=compiler_params,
    )(x3, *flat_params)

    if not ncw_in_kernel:
        out = jnp.swapaxes(out, 1, 2)                       # single NTC -> NCW permute outside
    return out


def init_params(channels, key):
    """Deterministic init matching nn.Conv1d shapes: W (Cout, Cin, 2), b (Cout,)."""
    kernel_size = 2
    in_channels = [1] + list(channels[:-1])
    params = []
    for cin, cout in zip(in_channels, channels):
        key, k_w, k_b = jax.random.split(key, 3)
        bound = 1.0 / np.sqrt(cin * kernel_size)  # PyTorch Conv1d default U(-sqrt(k), sqrt(k))
        w = jax.random.uniform(k_w, (cout, cin, kernel_size), jnp.float32, -bound, bound)
        b = jax.random.uniform(k_b, (cout,), jnp.float32, -bound, bound)
        params.append((w, b))
    return params


def causal_conv_reference(x, params):
    """Pure-JAX reference of the PyTorch forward (NCW layout) for validation."""
    h = x[:, None, :].astype(jnp.float32)                   # (B, 1, T)
    for w, b in params:
        y = (jnp.einsum('bct,oc->bot', h[:, :, :-1], w[:, :, 0])
             + jnp.einsum('bct,oc->bot', h[:, :, 1:], w[:, :, 1])
             + b[None, :, None])
        h = jnp.pad(y, ((0, 0), (0, 0), (1, 0)))
    return h


if __name__ == "__main__":
    key = jax.random.PRNGKey(0)
    k1, k2, k3, k4 = jax.random.split(key, 4)

    # ---- Config 1: original tiny shapes. All layers on the VPU FMA path (f32 exact),
    #      NTC store + single external permute (T=16 is not a 128 multiple).
    B1, T1 = 2, 16
    channels1 = [4, 8, 16]
    x1 = jax.random.normal(k1, (B1, T1), jnp.float32)
    params1 = init_params(channels1, k2)
    packed1 = pack_params(params1)                          # packed once, reused every call
    out1 = jax.block_until_ready(causal_conv_forward(x1, packed1))
    ref1 = causal_conv_reference(x1, params1)
    assert out1.shape == (B1, channels1[-1], T1), out1.shape
    np.testing.assert_allclose(np.asarray(out1), np.asarray(ref1), rtol=1e-5, atol=1e-5)

    # ---- Config 2: wider layers / longer T. Exercises the MXU path, the lane-dense in-kernel
    #      NCW store (T=128), and the batch fold (bb = 4 -> M = 512 rows, 2 parallel grid steps).
    B2, T2 = 8, 128
    channels2 = [4, 64, 64]
    x2 = jax.random.normal(k3, (B2, T2), jnp.float32)
    params2 = init_params(channels2, k4)
    packed2 = pack_params(params2)
    ref2 = causal_conv_reference(x2, params2)

    # exact f32 MXU check
    out2_f32 = jax.block_until_ready(causal_conv_forward(x2, packed2, mxu_bf16=False))
    assert out2_f32.shape == (B2, channels2[-1], T2), out2_f32.shape
    np.testing.assert_allclose(np.asarray(out2_f32), np.asarray(ref2), rtol=1e-5, atol=1e-5)

    # bf16-operand MXU (native rate on v6e/v7x) needs a looser tolerance vs. the f32 reference.
    out2_bf16 = jax.block_until_ready(causal_conv_forward(x2, packed2, mxu_bf16=True))
    np.testing.assert_allclose(np.asarray(out2_bf16), np.asarray(ref2), rtol=3e-2, atol=3e-2)

    print("KERNEL_OK")
</pallas_src>

<mosaic_0001>
module attributes {stable_mosaic.version = 11 : i64} {
  func.func @kernel(%arg0: i32, %arg1: memref<1x16x1xf32, #tpu.memory_space<vmem>>, %arg2: memref<1x4xf32, #tpu.memory_space<vmem>>, %arg3: memref<1x4xf32, #tpu.memory_space<vmem>>, %arg4: memref<1x4xf32, #tpu.memory_space<vmem>>, %arg5: memref<4x8xf32, #tpu.memory_space<vmem>>, %arg6: memref<4x8xf32, #tpu.memory_space<vmem>>, %arg7: memref<1x8xf32, #tpu.memory_space<vmem>>, %arg8: memref<8x16xf32, #tpu.memory_space<vmem>>, %arg9: memref<8x16xf32, #tpu.memory_space<vmem>>, %arg10: memref<1x16xf32, #tpu.memory_space<vmem>>, %arg11: memref<1x16x16xf32, #tpu.memory_space<vmem>>) attributes {dimension_semantics = [#tpu.dimension_semantics<parallel>], iteration_bounds = array<i64: 2>, scalar_prefetch = 0 : i64, scratch_operands = 0 : i64, tpu.core_type = #tpu.core_type<tc>, window_params = [{transform_indices = @transform_0, window_bounds = array<i64: 1, 16, 1>}, {pipeline_mode = #tpu.pipeline_mode<synchronous>, transform_indices = @transform_1, window_bounds = array<i64: 1, 4>}, {pipeline_mode = #tpu.pipeline_mode<synchronous>, transform_indices = @transform_2, window_bounds = array<i64: 1, 4>}, {pipeline_mode = #tpu.pipeline_mode<synchronous>, transform_indices = @transform_3, window_bounds = array<i64: 1, 4>}, {pipeline_mode = #tpu.pipeline_mode<synchronous>, transform_indices = @transform_4, window_bounds = array<i64: 4, 8>}, {pipeline_mode = #tpu.pipeline_mode<synchronous>, transform_indices = @transform_5, window_bounds = array<i64: 4, 8>}, {pipeline_mode = #tpu.pipeline_mode<synchronous>, transform_indices = @transform_6, window_bounds = array<i64: 1, 8>}, {pipeline_mode = #tpu.pipeline_mode<synchronous>, transform_indices = @transform_7, window_bounds = array<i64: 8, 16>}, {pipeline_mode = #tpu.pipeline_mode<synchronous>, transform_indices = @transform_8, window_bounds = array<i64: 8, 16>}, {pipeline_mode = #tpu.pipeline_mode<synchronous>, transform_indices = @transform_9, window_bounds = array<i64: 1, 16>}, {transform_indices = @transform_10, window_bounds = array<i64: 1, 16, 16>}]} {
    %c0 = arith.constant 0 : index
    %c0_0 = arith.constant 0 : index
    %c0_1 = arith.constant 0 : index
    %0 = vector.load %arg1[%c0, %c0_0, %c0_1] : memref<1x16x1xf32, #tpu.memory_space<vmem>>, vector<1x16x1xf32>
    %1 = vector.shape_cast %0 : vector<1x16x1xf32> to vector<16x1xf32>
    %2 = tpu.iota {dimensions = array<i32: 0>} : vector<16x1xi32>
    %c0_i32 = arith.constant 0 : i32
    %3 = vector.broadcast %c0_i32 : i32 to vector<16x1xi32>
    %4 = arith.cmpi eq, %2, %3 : vector<16x1xi32>
    %c1_i32 = arith.constant 1 : i32
    %5 = tpu.dynamic_rotate %1 by %c1_i32 dim 0 : vector<16x1xf32>, i32 -> vector<16x1xf32>
    %c0_2 = arith.constant 0 : index
    %c0_3 = arith.constant 0 : index
    %6 = vector.load %arg2[%c0_2, %c0_3] : memref<1x4xf32, #tpu.memory_space<vmem>>, vector<1x4xf32>
    %c0_4 = arith.constant 0 : index
    %c0_5 = arith.constant 0 : index
    %7 = vector.load %arg3[%c0_4, %c0_5] : memref<1x4xf32, #tpu.memory_space<vmem>>, vector<1x4xf32>
    %c0_6 = arith.constant 0 : index
    %c0_7 = arith.constant 0 : index
    %8 = vector.load %arg4[%c0_6, %c0_7] : memref<1x4xf32, #tpu.memory_space<vmem>>, vector<1x4xf32>
    %9 = vector.broadcast %5 : vector<16x1xf32> to vector<16x4xf32>
    %10 = vector.broadcast %6 : vector<1x4xf32> to vector<16x4xf32>
    %11 = arith.mulf %9, %10 : vector<16x4xf32>
    %12 = vector.broadcast %8 : vector<1x4xf32> to vector<16x4xf32>
    %13 = arith.addf %12, %11 : vector<16x4xf32>
    %14 = vector.broadcast %1 : vector<16x1xf32> to vector<16x4xf32>
    %15 = vector.broadcast %7 : vector<1x4xf32> to vector<16x4xf32>
    %16 = arith.mulf %14, %15 : vector<16x4xf32>
    %17 = arith.addf %13, %16 : vector<16x4xf32>
    %cst = arith.constant 0.000000e+00 : f32
    %18 = vector.shape_cast %4 : vector<16x1xi1> to vector<16x1xi1>
    %19 = vector.broadcast %18 : vector<16x1xi1> to vector<16x4xi1>
    %20 = vector.broadcast %cst : f32 to vector<16x4xf32>
    %21 = arith.select %19, %20, %17 : vector<16x4xi1>, vector<16x4xf32>
    %c1_i32_8 = arith.constant 1 : i32
    %22 = tpu.dynamic_rotate %21 by %c1_i32_8 dim 0 : vector<16x4xf32>, i32 -> vector<16x4xf32>
    %c0_9 = arith.constant 0 : index
    %c0_10 = arith.constant 0 : index
    %23 = vector.load %arg5[%c0_9, %c0_10] : memref<4x8xf32, #tpu.memory_space<vmem>>, vector<4x8xf32>
    %c0_11 = arith.constant 0 : index
    %c0_12 = arith.constant 0 : index
    %24 = vector.load %arg6[%c0_11, %c0_12] : memref<4x8xf32, #tpu.memory_space<vmem>>, vector<4x8xf32>
    %c0_13 = arith.constant 0 : index
    %c0_14 = arith.constant 0 : index
    %25 = vector.load %arg7[%c0_13, %c0_14] : memref<1x8xf32, #tpu.memory_space<vmem>>, vector<1x8xf32>
    %26 = vector.extract_strided_slice %22 {offsets = [0, 0], sizes = [16, 1], strides = [1, 1]} : vector<16x4xf32> to vector<16x1xf32>
    %27 = vector.extract_strided_slice %23 {offsets = [0, 0], sizes = [1, 8], strides = [1, 1]} : vector<4x8xf32> to vector<1x8xf32>
    %28 = vector.broadcast %26 : vector<16x1xf32> to vector<16x8xf32>
    %29 = vector.broadcast %27 : vector<1x8xf32> to vector<16x8xf32>
    %30 = arith.mulf %28, %29 : vector<16x8xf32>
    %31 = vector.broadcast %25 : vector<1x8xf32> to vector<16x8xf32>
    %32 = arith.addf %31, %30 : vector<16x8xf32>
    %33 = vector.extract_strided_slice %21 {offsets = [0, 0], sizes = [16, 1], strides = [1, 1]} : vector<16x4xf32> to vector<16x1xf32>
    %34 = vector.extract_strided_slice %24 {offsets = [0, 0], sizes = [1, 8], strides = [1, 1]} : vector<4x8xf32> to vector<1x8xf32>
    %35 = vector.broadcast %33 : vector<16x1xf32> to vector<16x8xf32>
    %36 = vector.broadcast %34 : vector<1x8xf32> to vector<16x8xf32>
    %37 = arith.mulf %35, %36 : vector<16x8xf32>
    %38 = arith.addf %32, %37 : vector<16x8xf32>
    %39 = vector.extract_strided_slice %22 {offsets = [0, 1], sizes = [16, 1], strides = [1, 1]} : vector<16x4xf32> to vector<16x1xf32>
    %40 = vector.extract_strided_slice %23 {offsets = [1, 0], sizes = [1, 8], strides = [1, 1]} : vector<4x8xf32> to vector<1x8xf32>
    %41 = vector.broadcast %39 : vector<16x1xf32> to vector<16x8xf32>
    %42 = vector.broadcast %40 : vector<1x8xf32> to vector<16x8xf32>
    %43 = arith.mulf %41, %42 : vector<16x8xf32>
    %44 = arith.addf %38, %43 : vector<16x8xf32>
    %45 = vector.extract_strided_slice %21 {offsets = [0, 1], sizes = [16, 1], strides = [1, 1]} : vector<16x4xf32> to vector<16x1xf32>
    %46 = vector.extract_strided_slice %24 {offsets = [1, 0], sizes = [1, 8], strides = [1, 1]} : vector<4x8xf32> to vector<1x8xf32>
    %47 = vector.broadcast %45 : vector<16x1xf32> to vector<16x8xf32>
    %48 = vector.broadcast %46 : vector<1x8xf32> to vector<16x8xf32>
    %49 = arith.mulf %47, %48 : vector<16x8xf32>
    %50 = arith.addf %44, %49 : vector<16x8xf32>
    %51 = vector.extract_strided_slice %22 {offsets = [0, 2], sizes = [16, 1], strides = [1, 1]} : vector<16x4xf32> to vector<16x1xf32>
    %52 = vector.extract_strided_slice %23 {offsets = [2, 0], sizes = [1, 8], strides = [1, 1]} : vector<4x8xf32> to vector<1x8xf32>
    %53 = vector.broadcast %51 : vector<16x1xf32> to vector<16x8xf32>
    %54 = vector.broadcast %52 : vector<1x8xf32> to vector<16x8xf32>
    %55 = arith.mulf %53, %54 : vector<16x8xf32>
    %56 = arith.addf %50, %55 : vector<16x8xf32>
    %57 = vector.extract_strided_slice %21 {offsets = [0, 2], sizes = [16, 1], strides = [1, 1]} : vector<16x4xf32> to vector<16x1xf32>
    %58 = vector.extract_strided_slice %24 {offsets = [2, 0], sizes = [1, 8], strides = [1, 1]} : vector<4x8xf32> to vector<1x8xf32>
    %59 = vector.broadcast %57 : vector<16x1xf32> to vector<16x8xf32>
    %60 = vector.broadcast %58 : vector<1x8xf32> to vector<16x8xf32>
    %61 = arith.mulf %59, %60 : vector<16x8xf32>
    %62 = arith.addf %56, %61 : vector<16x8xf32>
    %63 = vector.extract_strided_slice %22 {offsets = [0, 3], sizes = [16, 1], strides = [1, 1]} : vector<16x4xf32> to vector<16x1xf32>
    %64 = vector.extract_strided_slice %23 {offsets = [3, 0], sizes = [1, 8], strides = [1, 1]} : vector<4x8xf32> to vector<1x8xf32>
    %65 = vector.broadcast %63 : vector<16x1xf32> to vector<16x8xf32>
    %66 = vector.broadcast %64 : vector<1x8xf32> to vector<16x8xf32>
    %67 = arith.mulf %65, %66 : vector<16x8xf32>
    %68 = arith.addf %62, %67 : vector<16x8xf32>
    %69 = vector.extract_strided_slice %21 {offsets = [0, 3], sizes = [16, 1], strides = [1, 1]} : vector<16x4xf32> to vector<16x1xf32>
    %70 = vector.extract_strided_slice %24 {offsets = [3, 0], sizes = [1, 8], strides = [1, 1]} : vector<4x8xf32> to vector<1x8xf32>
    %71 = vector.broadcast %69 : vector<16x1xf32> to vector<16x8xf32>
    %72 = vector.broadcast %70 : vector<1x8xf32> to vector<16x8xf32>
    %73 = arith.mulf %71, %72 : vector<16x8xf32>
    %74 = arith.addf %68, %73 : vector<16x8xf32>
    %cst_15 = arith.constant 0.000000e+00 : f32
    %75 = vector.shape_cast %4 : vector<16x1xi1> to vector<16x1xi1>
    %76 = vector.broadcast %75 : vector<16x1xi1> to vector<16x8xi1>
    %77 = vector.broadcast %cst_15 : f32 to vector<16x8xf32>
    %78 = arith.select %76, %77, %74 : vector<16x8xi1>, vector<16x8xf32>
    %c1_i32_16 = arith.constant 1 : i32
    %79 = tpu.dynamic_rotate %78 by %c1_i32_16 dim 0 : vector<16x8xf32>, i32 -> vector<16x8xf32>
    %c0_17 = arith.constant 0 : index
    %c0_18 = arith.constant 0 : index
    %80 = vector.load %arg8[%c0_17, %c0_18] : memref<8x16xf32, #tpu.memory_space<vmem>>, vector<8x16xf32>
    %c0_19 = arith.constant 0 : index
    %c0_20 = arith.constant 0 : index
    %81 = vector.load %arg9[%c0_19, %c0_20] : memref<8x16xf32, #tpu.memory_space<vmem>>, vector<8x16xf32>
    %c0_21 = arith.constant 0 : index
    %c0_22 = arith.constant 0 : index
    %82 = vector.load %arg10[%c0_21, %c0_22] : memref<1x16xf32, #tpu.memory_space<vmem>>, vector<1x16xf32>
    %83 = vector.extract_strided_slice %79 {offsets = [0, 0], sizes = [16, 1], strides = [1, 1]} : vector<16x8xf32> to vector<16x1xf32>
    %84 = vector.extract_strided_slice %80 {offsets = [0, 0], sizes = [1, 16], strides = [1, 1]} : vector<8x16xf32> to vector<1x16xf32>
    %85 = vector.broadcast %83 : vector<16x1xf32> to vector<16x16xf32>
    %86 = vector.broadcast %84 : vector<1x16xf32> to vector<16x16xf32>
    %87 = arith.mulf %85, %86 : vector<16x16xf32>
    %88 = vector.broadcast %82 : vector<1x16xf32> to vector<16x16xf32>
    %89 = arith.addf %88, %87 : vector<16x16xf32>
    %90 = vector.extract_strided_slice %78 {offsets = [0, 0], sizes = [16, 1], strides = [1, 1]} : vector<16x8xf32> to vector<16x1xf32>
    %91 = vector.extract_strided_slice %81 {offsets = [0, 0], sizes = [1, 16], strides = [1, 1]} : vector<8x16xf32> to vector<1x16xf32>
    %92 = vector.broadcast %90 : vector<16x1xf32> to vector<16x16xf32>
    %93 = vector.broadcast %91 : vector<1x16xf32> to vector<16x16xf32>
    %94 = arith.mulf %92, %93 : vector<16x16xf32>
    %95 = arith.addf %89, %94 : vector<16x16xf32>
    %96 = vector.extract_strided_slice %79 {offsets = [0, 1], sizes = [16, 1], strides = [1, 1]} : vector<16x8xf32> to vector<16x1xf32>
    %97 = vector.extract_strided_slice %80 {offsets = [1, 0], sizes = [1, 16], strides = [1, 1]} : vector<8x16xf32> to vector<1x16xf32>
    %98 = vector.broadcast %96 : vector<16x1xf32> to vector<16x16xf32>
    %99 = vector.broadcast %97 : vector<1x16xf32> to vector<16x16xf32>
    %100 = arith.mulf %98, %99 : vector<16x16xf32>
    %101 = arith.addf %95, %100 : vector<16x16xf32>
    %102 = vector.extract_strided_slice %78 {offsets = [0, 1], sizes = [16, 1], strides = [1, 1]} : vector<16x8xf32> to vector<16x1xf32>
    %103 = vector.extract_strided_slice %81 {offsets = [1, 0], sizes = [1, 16], strides = [1, 1]} : vector<8x16xf32> to vector<1x16xf32>
    %104 = vector.broadcast %102 : vector<16x1xf32> to vector<16x16xf32>
    %105 = vector.broadcast %103 : vector<1x16xf32> to vector<16x16xf32>
    %106 = arith.mulf %104, %105 : vector<16x16xf32>
    %107 = arith.addf %101, %106 : vector<16x16xf32>
    %108 = vector.extract_strided_slice %79 {offsets = [0, 2], sizes = [16, 1], strides = [1, 1]} : vector<16x8xf32> to vector<16x1xf32>
    %109 = vector.extract_strided_slice %80 {offsets = [2, 0], sizes = [1, 16], strides = [1, 1]} : vector<8x16xf32> to vector<1x16xf32>
    %110 = vector.broadcast %108 : vector<16x1xf32> to vector<16x16xf32>
    %111 = vector.broadcast %109 : vector<1x16xf32> to vector<16x16xf32>
    %112 = arith.mulf %110, %111 : vector<16x16xf32>
    %113 = arith.addf %107, %112 : vector<16x16xf32>
    %114 = vector.extract_strided_slice %78 {offsets = [0, 2], sizes = [16, 1], strides = [1, 1]} : vector<16x8xf32> to vector<16x1xf32>
    %115 = vector.extract_strided_slice %81 {offsets = [2, 0], sizes = [1, 16], strides = [1, 1]} : vector<8x16xf32> to vector<1x16xf32>
    %116 = vector.broadcast %114 : vector<16x1xf32> to vector<16x16xf32>
    %117 = vector.broadcast %115 : vector<1x16xf32> to vector<16x16xf32>
    %118 = arith.mulf %116, %117 : vector<16x16xf32>
    %119 = arith.addf %113, %118 : vector<16x16xf32>
    %120 = vector.extract_strided_slice %79 {offsets = [0, 3], sizes = [16, 1], strides = [1, 1]} : vector<16x8xf32> to vector<16x1xf32>
    %121 = vector.extract_strided_slice %80 {offsets = [3, 0], sizes = [1, 16], strides = [1, 1]} : vector<8x16xf32> to vector<1x16xf32>
    %122 = vector.broadcast %120 : vector<16x1xf32> to vector<16x16xf32>
    %123 = vector.broadcast %121 : vector<1x16xf32> to vector<16x16xf32>
    %124 = arith.mulf %122, %123 : vector<16x16xf32>
    %125 = arith.addf %119, %124 : vector<16x16xf32>
    %126 = vector.extract_strided_slice %78 {offsets = [0, 3], sizes = [16, 1], strides = [1, 1]} : vector<16x8xf32> to vector<16x1xf32>
    %127 = vector.extract_strided_slice %81 {offsets = [3, 0], sizes = [1, 16], strides = [1, 1]} : vector<8x16xf32> to vector<1x16xf32>
    %128 = vector.broadcast %126 : vector<16x1xf32> to vector<16x16xf32>
    %129 = vector.broadcast %127 : vector<1x16xf32> to vector<16x16xf32>
    %130 = arith.mulf %128, %129 : vector<16x16xf32>
    %131 = arith.addf %125, %130 : vector<16x16xf32>
    %132 = vector.extract_strided_slice %79 {offsets = [0, 4], sizes = [16, 1], strides = [1, 1]} : vector<16x8xf32> to vector<16x1xf32>
    %133 = vector.extract_strided_slice %80 {offsets = [4, 0], sizes = [1, 16], strides = [1, 1]} : vector<8x16xf32> to vector<1x16xf32>
    %134 = vector.broadcast %132 : vector<16x1xf32> to vector<16x16xf32>
    %135 = vector.broadcast %133 : vector<1x16xf32> to vector<16x16xf32>
    %136 = arith.mulf %134, %135 : vector<16x16xf32>
    %137 = arith.addf %131, %136 : vector<16x16xf32>
    %138 = vector.extract_strided_slice %78 {offsets = [0, 4], sizes = [16, 1], strides = [1, 1]} : vector<16x8xf32> to vector<16x1xf32>
    %139 = vector.extract_strided_slice %81 {offsets = [4, 0], sizes = [1, 16], strides = [1, 1]} : vector<8x16xf32> to vector<1x16xf32>
    %140 = vector.broadcast %138 : vector<16x1xf32> to vector<16x16xf32>
    %141 = vector.broadcast %139 : vector<1x16xf32> to vector<16x16xf32>
    %142 = arith.mulf %140, %141 : vector<16x16xf32>
    %143 = arith.addf %137, %142 : vector<16x16xf32>
    %144 = vector.extract_strided_slice %79 {offsets = [0, 5], sizes = [16, 1], strides = [1, 1]} : vector<16x8xf32> to vector<16x1xf32>
    %145 = vector.extract_strided_slice %80 {offsets = [5, 0], sizes = [1, 16], strides = [1, 1]} : vector<8x16xf32> to vector<1x16xf32>
    %146 = vector.broadcast %144 : vector<16x1xf32> to vector<16x16xf32>
    %147 = vector.broadcast %145 : vector<1x16xf32> to vector<16x16xf32>
    %148 = arith.mulf %146, %147 : vector<16x16xf32>
    %149 = arith.addf %143, %148 : vector<16x16xf32>
    %150 = vector.extract_strided_slice %78 {offsets = [0, 5], sizes = [16, 1], strides = [1, 1]} : vector<16x8xf32> to vector<16x1xf32>
    %151 = vector.extract_strided_slice %81 {offsets = [5, 0], sizes = [1, 16], strides = [1, 1]} : vector<8x16xf32> to vector<1x16xf32>
    %152 = vector.broadcast %150 : vector<16x1xf32> to vector<16x16xf32>
    %153 = vector.broadcast %151 : vector<1x16xf32> to vector<16x16xf32>
    %154 = arith.mulf %152, %153 : vector<16x16xf32>
    %155 = arith.addf %149, %154 : vector<16x16xf32>
    %156 = vector.extract_strided_slice %79 {offsets = [0, 6], sizes = [16, 1], strides = [1, 1]} : vector<16x8xf32> to vector<16x1xf32>
    %157 = vector.extract_strided_slice %80 {offsets = [6, 0], sizes = [1, 16], strides = [1, 1]} : vector<8x16xf32> to vector<1x16xf32>
    %158 = vector.broadcast %156 : vector<16x1xf32> to vector<16x16xf32>
    %159 = vector.broadcast %157 : vector<1x16xf32> to vector<16x16xf32>
    %160 = arith.mulf %158, %159 : vector<16x16xf32>
    %161 = arith.addf %155, %160 : vector<16x16xf32>
    %162 = vector.extract_strided_slice %78 {offsets = [0, 6], sizes = [16, 1], strides = [1, 1]} : vector<16x8xf32> to vector<16x1xf32>
    %163 = vector.extract_strided_slice %81 {offsets = [6, 0], sizes = [1, 16], strides = [1, 1]} : vector<8x16xf32> to vector<1x16xf32>
    %164 = vector.broadcast %162 : vector<16x1xf32> to vector<16x16xf32>
    %165 = vector.broadcast %163 : vector<1x16xf32> to vector<16x16xf32>
    %166 = arith.mulf %164, %165 : vector<16x16xf32>
    %167 = arith.addf %161, %166 : vector<16x16xf32>
    %168 = vector.extract_strided_slice %79 {offsets = [0, 7], sizes = [16, 1], strides = [1, 1]} : vector<16x8xf32> to vector<16x1xf32>
    %169 = vector.extract_strided_slice %80 {offsets = [7, 0], sizes = [1, 16], strides = [1, 1]} : vector<8x16xf32> to vector<1x16xf32>
    %170 = vector.broadcast %168 : vector<16x1xf32> to vector<16x16xf32>
    %171 = vector.broadcast %169 : vector<1x16xf32> to vector<16x16xf32>
    %172 = arith.mulf %170, %171 : vector<16x16xf32>
    %173 = arith.addf %167, %172 : vector<16x16xf32>
    %174 = vector.extract_strided_slice %78 {offsets = [0, 7], sizes = [16, 1], strides = [1, 1]} : vector<16x8xf32> to vector<16x1xf32>
    %175 = vector.extract_strided_slice %81 {offsets = [7, 0], sizes = [1, 16], strides = [1, 1]} : vector<8x16xf32> to vector<1x16xf32>
    %176 = vector.broadcast %174 : vector<16x1xf32> to vector<16x16xf32>
    %177 = vector.broadcast %175 : vector<1x16xf32> to vector<16x16xf32>
    %178 = arith.mulf %176, %177 : vector<16x16xf32>
    %179 = arith.addf %173, %178 : vector<16x16xf32>
    %cst_23 = arith.constant 0.000000e+00 : f32
    %180 = vector.shape_cast %4 : vector<16x1xi1> to vector<16x1xi1>
    %181 = vector.broadcast %180 : vector<16x1xi1> to vector<16x16xi1>
    %182 = vector.broadcast %cst_23 : f32 to vector<16x16xf32>
    %183 = arith.select %181, %182, %179 : vector<16x16xi1>, vector<16x16xf32>
    %184 = vector.shape_cast %183 : vector<16x16xf32> to vector<1x16x16xf32>
    %c0_24 = arith.constant 0 : index
    %c0_25 = arith.constant 0 : index
    %c0_26 = arith.constant 0 : index
    %185 = vector.load %arg11[%c0_24, %c0_25, %c0_26] : memref<1x16x16xf32, #tpu.memory_space<vmem>>, vector<1x16x16xf32>
    tpu.vector_store %arg11[%c0_24, %c0_25, %c0_26], %184 {strides = array<i32>} : memref<1x16x16xf32, #tpu.memory_space<vmem>>, vector<1x16x16xf32>,
    return
  }
  func.func @transform_0(%arg0: i32) -> (i32, i32, i32) {
    %c0_i32 = arith.constant 0 : i32
    %c0_i32_0 = arith.constant 0 : i32
    %c0_i32_1 = arith.constant 0 : i32
    return %arg0, %c0_i32, %c0_i32_0 : i32, i32, i32
  }
  func.func @transform_1(%arg0: i32) -> (i32, i32) {
    %c0_i32 = arith.constant 0 : i32
    %c0_i32_0 = arith.constant 0 : i32
    %c0_i32_1 = arith.constant 0 : i32
    return %c0_i32, %c0_i32_0 : i32, i32
  }
  func.func @transform_2(%arg0: i32) -> (i32, i32) {
    %c0_i32 = arith.constant 0 : i32
    %c0_i32_0 = arith.constant 0 : i32
    %c0_i32_1 = arith.constant 0 : i32
    return %c0_i32, %c0_i32_0 : i32, i32
  }
  func.func @transform_3(%arg0: i32) -> (i32, i32) {
    %c0_i32 = arith.constant 0 : i32
    %c0_i32_0 = arith.constant 0 : i32
    %c0_i32_1 = arith.constant 0 : i32
    return %c0_i32, %c0_i32_0 : i32, i32
  }
  func.func @transform_4(%arg0: i32) -> (i32, i32) {
    %c0_i32 = arith.constant 0 : i32
    %c0_i32_0 = arith.constant 0 : i32
    %c0_i32_1 = arith.constant 0 : i32
    return %c0_i32, %c0_i32_0 : i32, i32
  }
  func.func @transform_5(%arg0: i32) -> (i32, i32) {
    %c0_i32 = arith.constant 0 : i32
    %c0_i32_0 = arith.constant 0 : i32
    %c0_i32_1 = arith.constant 0 : i32
    return %c0_i32, %c0_i32_0 : i32, i32
  }
  func.func @transform_6(%arg0: i32) -> (i32, i32) {
    %c0_i32 = arith.constant 0 : i32
    %c0_i32_0 = arith.constant 0 : i32
    %c0_i32_1 = arith.constant 0 : i32
    return %c0_i32, %c0_i32_0 : i32, i32
  }
  func.func @transform_7(%arg0: i32) -> (i32, i32) {
    %c0_i32 = arith.constant 0 : i32
    %c0_i32_0 = arith.constant 0 : i32
    %c0_i32_1 = arith.constant 0 : i32
    return %c0_i32, %c0_i32_0 : i32, i32
  }
  func.func @transform_8(%arg0: i32) -> (i32, i32) {
    %c0_i32 = arith.constant 0 : i32
    %c0_i32_0 = arith.constant 0 : i32
    %c0_i32_1 = arith.constant 0 : i32
    return %c0_i32, %c0_i32_0 : i32, i32
  }
  func.func @transform_9(%arg0: i32) -> (i32, i32) {
    %c0_i32 = arith.constant 0 : i32
    %c0_i32_0 = arith.constant 0 : i32
    %c0_i32_1 = arith.constant 0 : i32
    return %c0_i32, %c0_i32_0 : i32, i32
  }
  func.func @transform_10(%arg0: i32) -> (i32, i32, i32) {
    %c0_i32 = arith.constant 0 : i32
    %c0_i32_0 = arith.constant 0 : i32
    %c0_i32_1 = arith.constant 0 : i32
    return %arg0, %c0_i32, %c0_i32_0 : i32, i32, i32
  }
}

</mosaic_0001>

<bundles_post_ra>
// kernel: tpu_custom_call.1
= control target key start
LH: loop header
LB: loop body
LE: loop exit
PB: predicated region body
PF: predicated region fallthrough
CT: control target
= control target key end

     0   :  { %15 = vsyncpa [#allocation3], 0  ;;  %s1315_s0 = inlined_call_operand.vmem [shape: f32[2,16,1], index: 0, kind: input, shape index: {}]   ;;  %s1316_s1 = inlined_call_operand.vmem [shape: f32[1,4], index: 1, kind: input, shape index: {}]   ;;  %s1317_s2 = inlined_call_operand.vmem [shape: f32[1,4], index: 2, kind: input, shape index: {}]   ;;  %s1318_s3 = inlined_call_operand.vmem [shape: f32[1,4], index: 3, kind: input, shape index: {}]   ;;  %s1319_s4 = inlined_call_operand.vmem [shape: f32[4,8], index: 4, kind: input, shape index: {}]   ;;  %s1320_s5 = inlined_call_operand.vmem [shape: f32[4,8], index: 5, kind: input, shape index: {}]   ;;  %s1321_s6 = inlined_call_operand.vmem [shape: f32[1,8], index: 6, kind: input, shape index: {}]   ;;  %s1322_s7 = inlined_call_operand.vmem [shape: f32[8,16], index: 7, kind: input, shape index: {}]   ;;  %s1323_s8 = inlined_call_operand.vmem [shape: f32[8,16], index: 8, kind: input, shape index: {}]   ;;  %s1324_s9 = inlined_call_operand.vmem [shape: f32[1,16], index: 9, kind: input, shape index: {}]   ;;  %s1325_s10 = inlined_call_operand.hbm [shape: f32[2,16,16], index: 10, kind: output, shape index: {}]  }
   0x1   :  { %17 = vsyncpa [#allocation3 + $0x1], 0  ;;  %s1085_s13 = smov 0   ;;  %s1087_s14 = smov 0  }
   0x2   :  { %s1089_s15 = smov 0   ;;  %s1091_s16 = smov 0  }
   0x3 LB: > { %s1106_s17 = sadd.s32 4294967295, %s1018_s16   ;;  %s841_s18 = sadd.s32 4294967294, %s1018_s16   ;;  %s1018_s16 = sphi %s1091_s16, %s1331_s16   ;;  %s1014_s15 = sphi %s1089_s15, %s1330_s15   ;;  %s1010_s14 = sphi %s1087_s14, %s1329_s14   ;;  %s1006_s13 = sphi %s1085_s13, %s1328_s13  }
   0x4   : > { %s1110_s19 = sadd.s32 1, %s1018_s16   ;;  %s245_s20 = sadd.s32 1, %s1014_s15 }
   0x5   : > { %s242_s21 = ssub.s32 %s1018_s16, %s1110_s19  ;;  %p255_p0 = scmp.ne.s32.totalorder %s1014_s15, %s1010_s14 }
   0x6   : > { %p243_p1 = scmp.eq.s32.totalorder %s242_s21, 0  ;;  %p256_p2 = scmp.eq.s32.totalorder %s1106_s17, 1 }
   0x7   : > { %p261_p3 = scmp.ne.s32.totalorder %s1010_s14, %s1006_s13  ;;  %p262_p4 = scmp.eq.s32.totalorder %s841_s18, 1 }
   0x8   : > { %s1121_s22 = scalar_select %p243_p1, %s1014_s15, %s245_s20  }
   0x9   : > { %p1123_p5 = por %p256_p2, %p255_p0  ;;  %p1127_p6 = por %p262_p4, %p261_p3 }
   0xa   : > { %p844_p7 = scmp.ge.s32.totalorder %s1018_s16, 1  ;;  %p315_p8 = scmp.lt.s32.totalorder %s1018_s16, 3 }
   0xc   : > { %p316_p9 = pnand %p844_p7, %p315_p8 }
   0xd   : > { %p353_p10 = scmp.lt.s32.totalorder (!%p316_p9), %s1106_s17, 1  ;;  %s854_s27 = sshll.u32 (!%p316_p9), %s1106_s17, 4 }
   0xe   : > { %319 = sbr.rel (%p316_p9) target bundleno = 549 (0x225), region = 60  ;;  %s775_s11 = scalar_lea.hbm (!%p316_p9), %s1325_s10, %s854_s27 }
   0xf   : > { %s778_s18 = sshll.u32 (!%p316_p9), %s775_s11, 4  ;;  %s779_s18 = int_to_ptr.hbm [resolvable:$true] %s778_s18 }
  0x10   : > { %s970_s21 = sshra.s32 (!%p316_p9), %s779_s18, 4  ;;  %s971_s21 = int_to_ptr.hbm [resolvable:$true] %s970_s21 }
  0x11   : > { %p977_p0 = scmp.lt.s32.totalorder (!%p316_p9), %s971_s21, %s1325_s10 }
  0x13   : > { %v360_v0 = vlaneseq  ;;  %v1020_v1 = vmov 0   ;;  %s354_s25 = scalar_select %p353_p10, %s1106_s17, 1  ;;  %v1021_v9 = vmov 1   ;;  %v1022_v10 = vmov 3   ;;  %v952_v13 = vld [vmem:[%s1316_s1] ss:$0 sm:$0xff] }
  0x14   : > { %904 = vset.pattern.permute.xlu1 %v1020_v1  ;;  %905 = vset.pattern.permute.xlu0 %v1020_v1  ;;  %v951_v16 = vld [vmem:[%s1317_s2] ss:$0 sm:$0xff]  ;;  %v1023_v27 = vmov 2   ;;  %v1024_v40 = vmov 4   ;;  %vm760_vm2 = vcmask 130048  }
  0x15   : > { %v1137_v2 = vshrl.u32 %v360_v0, 7  ;;  %s853_s26 = sshll.u32 %s354_s25, 4  ;;  %906 = vset.pattern.permute.xlu2 %v1021_v9  ;;  %v953_v17 = vld [vmem:[%s1318_s3] ss:$0 sm:$0xff]  ;;  %s972_s25 = scalar_lea.hbm %s971_s21, 16 }
  0x16   : > { %s357_s29 = scalar_lea.vmem %s1315_s0, %s853_s26  ;;  %v420_v41 = vld [vmem:[%s1319_s4] sm:$0xf]  ;;  %s350_s26 = sand.u32 1, %s1010_s14  }
  0x17   : > { %v358_v3 = vld [vmem:[%s357_s29] sm:$0xff]  ;;  %v359_v4 = vld [vmem:[%s357_s29 + $0x8] sm:$0xff]  ;;  %vm367_vm0 = vcmp.lt.s32.totalorder %v1137_v2, 1  ;;  %vm363_vm1 = vcmp.eq.s32.totalorder %v1137_v2, 0  ;;  %v433_v42 = vperm.slane %v420_v41, 0  ;;  %v464_v52 = vperm.slane %v420_v41, 1  ;;  %p973_p11 = scmp.ne.s32.totalorder %s971_s21, %s972_s25 }
  0x18   : > { %v366_v5 = vrot.slane %v359_v4, 7  ;;  %395 = vperm.xlu1 %904, %v358_v3   ;;  %v365_v6 = vrot.slane %v358_v3, 7  ;;  %v421_v46 = vld [vmem:[%s1320_s5] sm:$0xf]  ;;  %v490_v61 = vperm.slane %v420_v41, 2  ;;  %s845_s28 = sshll.u32 %s350_s26, 4 }
  0x19   : > { %v954_v48 = vld [vmem:[%s1321_s6] ss:$0 sm:$0xff]  ;;  %v451_v50 = vperm.slane %v421_v46, 0  ;;  %v477_v55 = vperm.slane %v421_v46, 1  ;;  %s352_s12 = scalar_lea.vmem [#allocation2], %s845_s28  ;;  %s764_s20 = scalar_lea.sflag [#allocation3], %s350_s26 }
  0x1a   : > { %v369_v7 = vsel %vm367_vm0, %v366_v5, %v365_v6  ;;  %v368_v8 = vsel %vm367_vm0, %v365_v6, %v366_v5  ;;  %v503_v5 = vperm.slane %v421_v46, 2  ;;  %s776_s17 = sshll.u32 %s352_s12, 4  ;;  %p974_p12 = pnand %p973_p11, %p1123_p5  ;;  %s777_s17 = int_to_ptr.vmem [resolvable:$true] %s776_s17 }
  0x1b   : > { %375 = vperm.xlu0 %905, %v369_v7   ;;  %s976_s29 = scalar_lea.hbm %s1325_s10, 32 }
  0x1c   : > { %p975_p13 = pneg %p974_p12  ;;  %p978_p1 = scmp.lt.s32.totalorder %s976_s29, %s972_s25 }
  0x1e   : > { %p979_p2 = por %p978_p1, %p977_p0 }
  0x20   : > { %400 = vperm.xlu1 %904, %v359_v4   ;;  %p980_p3 = pnand %p979_p2, %p975_p13 }
  0x23   : > { %380 = vperm.xlu0 %905, %v368_v8  }
  0x2b   : > { %908 = vset.pattern.permute.xlu0 %v1022_v10 }
  0x8a   : > { %v396_v11 = vpop.permute.xlu1 %395 }
  0x8b   : > { %v406_v23 = vmul.f32 %v951_v16, %v396_v11 }
  0x8d   : > { %v376_v12 = vpop.permute.xlu0 %375 }
  0x8e   : > { %v386_v19 = vmul.f32 %v952_v13, %v376_v12 }
  0x90   : > { %v391_v24 = vadd.f32 %v953_v17, %v386_v19  ;;  %v529_v19 = vperm.slane %v421_v46, 3 }
  0x92   : > { %v401_v14 = vpop.permute.xlu1 %400  ;;  %v408_v25 = vadd.f32 %v406_v23, %v391_v24 }
  0x93   : > { %v407_v20 = vmul.f32 %v951_v16, %v401_v14 }
  0x94   : > { %v414_v26 = vsel %vm363_vm1, 0.0, %v408_v25 }
  0x95   : > { %v381_v15 = vpop.permute.xlu0 %380  ;;  %v416_v29 = vrot.slane %v414_v26, 7 }
  0x96   : > { %v387_v18 = vmul.f32 %v952_v13, %v381_v15  ;;  %v516_v15 = vperm.slane %v420_v41, 3  ;;  %v1027_v41 = vmov 7  }
  0x98   : > { %v392_v21 = vadd.f32 %v953_v17, %v387_v18 }
  0x9a   : > { %v409_v22 = vadd.f32 %v407_v20, %v392_v21 }
  0x9c   : > { %526 = vperm.xlu0 %908, %v409_v22   ;;  %474 = vperm.xlu2 %906, %v409_v22   ;;  %v417_v28 = vrot.slane %v409_v22, 7 }
  0x9d   : > { %448 = vperm.xlu1 %904, %v409_v22  }
  0x9e   : > { %v419_v30 = vsel %vm367_vm0, %v417_v28, %v416_v29  ;;  %v418_v31 = vsel %vm367_vm0, %v416_v29, %v417_v28 }
  0xa4   : > { %909 = vset.pattern.permute.xlu0 %v1020_v1  ;;  %912 = vset.pattern.permute.xlu2 %v1022_v10 }
  0xa5   : > { %907 = vset.pattern.permute.xlu1 %v1023_v27  ;;  %443 = vperm.xlu0 %909, %v414_v26  }
  0xa6   : > { %522 = vperm.xlu2 %912, %v414_v26   ;;  %500 = vperm.xlu1 %907, %v409_v22  }
  0xad   : > { %911 = vset.pattern.permute.xlu0 %v1023_v27 }
  0xae   : > { %913 = vset.pattern.permute.xlu2 %v1020_v1  ;;  %910 = vset.pattern.permute.xlu1 %v1021_v9 }
  0xaf   : > { %496 = vperm.xlu0 %911, %v414_v26   ;;  %470 = vperm.xlu1 %910, %v414_v26  }
  0xb0   : > { %425 = vperm.xlu2 %913, %v419_v30  }
  0xb7   : > { %915 = vset.pattern.permute.xlu0 %v1021_v9  ;;  %916 = vset.pattern.permute.xlu1 %v1023_v27 }
  0xb8   : > { %430 = vperm.xlu2 %913, %v418_v31   ;;  %483 = vperm.xlu1 %916, %v419_v30  }
  0xb9   : > { %461 = vperm.xlu0 %915, %v418_v31  }
  0xc0   : > { %914 = vset.pattern.permute.xlu2 %v1021_v9  ;;  %919 = vset.pattern.permute.xlu1 %v1022_v10 }
  0xc1   : > { %457 = vperm.xlu2 %914, %v419_v30   ;;  %513 = vperm.xlu1 %919, %v418_v31  }
  0xc2   : > { %924 = vset.pattern.permute.xlu0 %v1024_v40 }
  0xc9   : > { %917 = vset.pattern.permute.xlu2 %v1023_v27  ;;  %921 = vset.pattern.permute.xlu1 %v1021_v9 }
  0xca   : > { %487 = vperm.xlu2 %917, %v418_v31  }
  0xd2   : > { %918 = vset.pattern.permute.xlu2 %v1022_v10 }
  0xd3   : > { %509 = vperm.xlu2 %918, %v419_v30  }
  0xdb   : > { %920 = vset.pattern.permute.xlu2 %v1020_v1 }
  0xf6   : > { %v475_v32 = vpop.permute.xlu2 %474 }
  0xf7   : > { %v479_v4 = vmul.f32 %v477_v55, %v475_v32 }
 0x100   : > { %v523_v33 = vpop.permute.xlu2 %522 }
 0x101   : > { %v530_v31 = vmul.f32 %v529_v19, %v523_v33  ;;  %v1025_v33 = vmov 6  }
 0x10a   : > { %v426_v34 = vpop.permute.xlu2 %425 }
 0x10b   : > { %v434_v49 = vmul.f32 %v433_v42, %v426_v34 }
 0x10d   : > { %v439_v54 = vadd.f32 %v954_v48, %v434_v49 }
 0x10e   : > { %v527_v35 = vpop.permute.xlu0 %526 }
 0x10f   : > { %v449_v36 = vpop.permute.xlu1 %448  ;;  %v531_v23 = vmul.f32 %v529_v19, %v527_v35 }
 0x110   : > { %v453_v56 = vmul.f32 %v451_v50, %v449_v36 }
 0x112   : > { %v431_v38 = vpop.permute.xlu2 %430 }
 0x113   : > { %v435_v47 = vmul.f32 %v433_v42, %v431_v38 }
 0x115   : > { %v440_v53 = vadd.f32 %v954_v48, %v435_v47 }
 0x117   : > { %v444_v37 = vpop.permute.xlu0 %443  ;;  %v455_v63 = vadd.f32 %v453_v56, %v440_v53 }
 0x118   : > { %v501_v39 = vpop.permute.xlu1 %500  ;;  %v452_v51 = vmul.f32 %v451_v50, %v444_v37  ;;  %v1026_v37 = vmov 5  }
 0x119   : > { %v505_v14 = vmul.f32 %v503_v5, %v501_v39 }
 0x11a   : > { %v454_v58 = vadd.f32 %v452_v51, %v439_v54 }
 0x11b   : > { %v458_v45 = vpop.permute.xlu2 %457 }
 0x11c   : > { %v465_v59 = vmul.f32 %v464_v52, %v458_v45 }
 0x11e   : > { %v467_v7 = vadd.f32 %v465_v59, %v454_v58  ;;  %v955_v58 = vld [vmem:[%s1324_s9] ss:$0 sm:$0xff] }
 0x121   : > { %v497_v43 = vpop.permute.xlu0 %496  ;;  %v471_v44 = vpop.permute.xlu1 %470 }
 0x122   : > { %v478_v3 = vmul.f32 %v477_v55, %v471_v44  ;;  %v504_v22 = vmul.f32 %v503_v5, %v497_v43  ;;  %v1255_v55 = vld [vmem:[%s1323_s8] sm:$0xff] }
 0x124   : > { %v488_v62 = vpop.permute.xlu2 %487  ;;  %v480_v13 = vadd.f32 %v478_v3, %v467_v7 }
 0x125   : > { %v492_v11 = vmul.f32 %v490_v61, %v488_v62 }
 0x12a   : > { %v484_v57 = vpop.permute.xlu1 %483 }
 0x12b   : > { %v462_v60 = vpop.permute.xlu0 %461  ;;  %v491_v8 = vmul.f32 %v490_v61, %v484_v57  ;;  %v571_v61 = vperm.slane %v1255_v55, 0 }
 0x12c   : > { %v466_v0 = vmul.f32 %v464_v52, %v462_v60  ;;  %v1249_v52 = vld [vmem:[%s1322_s7] sm:$0xff] }
 0x12d   : > { %v493_v17 = vadd.f32 %v491_v8, %v480_v13  ;;  %v510_v24 = vpop.permute.xlu2 %509  ;;  %v553_v53 = vperm.slane %v1249_v52, 0 }
 0x12e   : > { %v468_v6 = vadd.f32 %v466_v0, %v455_v63  ;;  %v517_v29 = vmul.f32 %v516_v15, %v510_v24  ;;  %v584_v63 = vperm.slane %v1249_v52, 1 }
 0x12f   : > { %v506_v26 = vadd.f32 %v504_v22, %v493_v17  ;;  %v623_v17 = vperm.slane %v1255_v55, 2  ;;  %v636_v22 = vperm.slane %v1249_v52, 3 }
 0x130   : > { %v481_v12 = vadd.f32 %v479_v4, %v468_v6  ;;  %v597_v6 = vperm.slane %v1255_v55, 1 }
 0x131   : > { %v519_v30 = vadd.f32 %v517_v29, %v506_v26  ;;  %v649_v26 = vperm.slane %v1255_v55, 3 }
 0x132   : > { %v494_v16 = vadd.f32 %v492_v11, %v481_v12  ;;  %v610_v12 = vperm.slane %v1249_v52, 2 }
 0x133   : > { %v514_v18 = vpop.permute.xlu1 %513  ;;  %v532_v32 = vadd.f32 %v530_v31, %v519_v30 }
 0x134   : > { %v507_v20 = vadd.f32 %v505_v14, %v494_v16  ;;  %v518_v21 = vmul.f32 %v516_v15, %v514_v18 }
 0x135   : > { %v1198_v34 = vsel %vm363_vm1, 0.0, %v532_v32 }
 0x136   : > { %v520_v25 = vadd.f32 %v518_v21, %v507_v20  ;;  %v536_v36 = vrot.slane %v1198_v34, 7 }
 0x138   : > { %v1189_v28 = vadd.f32 %v531_v23, %v520_v25 }
 0x13a   : > { %672 = vperm.xlu0 %924, %v1189_v28   ;;  %594 = vperm.xlu1 %921, %v1189_v28   ;;  %v537_v35 = vrot.slane %v1189_v28, 7 }
 0x13b   : > { %568 = vperm.xlu2 %920, %v1189_v28  }
 0x13c   : > { %v539_v38 = vsel %vm367_vm0, %v537_v35, %v536_v36  ;;  %v538_v39 = vsel %vm367_vm0, %v536_v36, %v537_v35 }
 0x142   : > { %930 = vset.pattern.permute.xlu0 %v1022_v10  ;;  %923 = vset.pattern.permute.xlu1 %v1022_v10 }
 0x143   : > { %922 = vset.pattern.permute.xlu2 %v1023_v27  ;;  %646 = vperm.xlu1 %923, %v1189_v28  }
 0x144   : > { %620 = vperm.xlu2 %922, %v1189_v28   ;;  %642 = vperm.xlu0 %930, %v1198_v34  }
 0x14b   : > { %926 = vset.pattern.permute.xlu1 %v1025_v33 }
 0x14c   : > { %925 = vset.pattern.permute.xlu2 %v1026_v37  ;;  %936 = vset.pattern.permute.xlu0 %v1021_v9 }
 0x14d   : > { %724 = vperm.xlu1 %926, %v1189_v28   ;;  %698 = vperm.xlu2 %925, %v1189_v28  }
 0x14e   : > { %577 = vperm.xlu0 %936, %v539_v38  }
 0x155   : > { %927 = vset.pattern.permute.xlu1 %v1020_v1  ;;  %928 = vset.pattern.permute.xlu2 %v1021_v9 }
 0x156   : > { %939 = vset.pattern.permute.xlu0 %v1023_v27  ;;  %590 = vperm.xlu2 %928, %v1198_v34  }
 0x157   : > { %563 = vperm.xlu1 %927, %v1198_v34   ;;  %607 = vperm.xlu0 %939, %v538_v39  }
 0x15e   : > { %931 = vset.pattern.permute.xlu2 %v1024_v40 }
 0x15f   : > { %929 = vset.pattern.permute.xlu1 %v1023_v27  ;;  %946 = vset.pattern.permute.xlu0 %v1025_v33 }
 0x160   : > { %668 = vperm.xlu2 %931, %v1198_v34   ;;  %616 = vperm.xlu1 %929, %v1198_v34  }
 0x161   : > { %707 = vperm.xlu0 %946, %v539_v38  }
 0x168   : > { %933 = vset.pattern.permute.xlu2 %v1025_v33  ;;  %932 = vset.pattern.permute.xlu1 %v1026_v37 }
 0x169   : > { %949 = vset.pattern.permute.xlu0 %v1027_v41  ;;  %720 = vperm.xlu2 %933, %v1198_v34  }
 0x16a   : > { %694 = vperm.xlu1 %932, %v1198_v34   ;;  %737 = vperm.xlu0 %949, %v538_v39  }
 0x171   : > { %935 = vset.pattern.permute.xlu2 %v1020_v1 }
 0x172   : > { %934 = vset.pattern.permute.xlu1 %v1020_v1  ;;  %550 = vperm.xlu2 %935, %v538_v39  }
 0x173   : > { %545 = vperm.xlu1 %934, %v539_v38  }
 0x17a   : > { %938 = vset.pattern.permute.xlu2 %v1023_v27 }
 0x17b   : > { %937 = vset.pattern.permute.xlu1 %v1021_v9  ;;  %603 = vperm.xlu2 %938, %v539_v38  }
 0x17c   : > { %581 = vperm.xlu1 %937, %v538_v39  }
 0x183   : > { %941 = vset.pattern.permute.xlu2 %v1022_v10 }
 0x184   : > { %940 = vset.pattern.permute.xlu1 %v1022_v10  ;;  %633 = vperm.xlu2 %941, %v538_v39  }
 0x185   : > { %629 = vperm.xlu1 %940, %v539_v38  }
 0x18c   : > { %942 = vset.pattern.permute.xlu2 %v1024_v40 }
 0x18d   : > { %943 = vset.pattern.permute.xlu1 %v1024_v40  ;;  %655 = vperm.xlu2 %942, %v539_v38  }
 0x18e   : > { %659 = vperm.xlu1 %943, %v538_v39  }
 0x195   : > { %945 = vset.pattern.permute.xlu2 %v1026_v37  ;;  %v569_v1 = vpop.permute.xlu2 %568 }
 0x196   : > { %944 = vset.pattern.permute.xlu1 %v1026_v37  ;;  %685 = vperm.xlu2 %945, %v538_v39   ;;  %v573_v5 = vmul.f32 %v571_v61, %v569_v1 }
 0x197   : > { %681 = vperm.xlu1 %944, %v539_v38  }
 0x19e   : > { %948 = vset.pattern.permute.xlu2 %v1027_v41  ;;  %v621_v9 = vpop.permute.xlu2 %620 }
 0x19f   : > { %947 = vset.pattern.permute.xlu1 %v1025_v33  ;;  %733 = vperm.xlu2 %948, %v539_v38   ;;  %v625_v25 = vmul.f32 %v623_v17, %v621_v9  ;;  %v662_v9 = vperm.slane %v1249_v52, 4 }
 0x1a0   : > { %711 = vperm.xlu1 %947, %v538_v39  }
 0x1a7   : > { %750 = vperm.xlu2 %948, %v1189_v28   ;;  %v1234_v27 = vpop.permute.xlu2 %698 }
 0x1a8   : > { %950 = vset.pattern.permute.xlu1 %v1027_v41 }
 0x1a9   : > { %746 = vperm.xlu1 %950, %v1198_v34  }
 0x1ac   : > { %v595_v10 = vpop.permute.xlu1 %594  ;;  %v1242_v47 = vpop.permute.xlu0 %672 }
 0x1ad   : > { %v599_v18 = vmul.f32 %v597_v6, %v595_v10  ;;  %v675_v10 = vperm.slane %v1255_v55, 4 }
 0x1b0   : > { %v591_v42 = vpop.permute.xlu2 %590 }
 0x1b1   : > { %v598_v20 = vmul.f32 %v597_v6, %v591_v42 }
 0x1b5   : > { %v647_v40 = vpop.permute.xlu1 %646 }
 0x1b6   : > { %v643_v50 = vpop.permute.xlu0 %642  ;;  %v651_v33 = vmul.f32 %v649_v26, %v647_v40  ;;  %v677_v40 = vmul.f32 %v675_v10, %v1242_v47  ;;  %v714_v47 = vperm.slane %v1249_v52, 6 }
 0x1b7   : > { %v650_v42 = vmul.f32 %v649_v26, %v643_v50 }
 0x1ba   : > { %v1238_v44 = vpop.permute.xlu2 %668 }
 0x1bb   : > { %v676_v50 = vmul.f32 %v675_v10, %v1238_v44  ;;  %v740_v44 = vperm.slane %v1249_v52, 7 }
 0x1bf   : > { %v1236_v43 = vpop.permute.xlu1 %724 }
 0x1c0   : > { %v578_v57 = vpop.permute.xlu0 %577 }
 0x1c1   : > { %v585_v7 = vmul.f32 %v584_v63, %v578_v57  ;;  %v701_v57 = vperm.slane %v1255_v55, 5 }
 0x1c3   : > { %v1240_v46 = vpop.permute.xlu2 %720 }
 0x1c9   : > { %v564_v45 = vpop.permute.xlu1 %563  ;;  %v608_v15 = vpop.permute.xlu0 %607 }
 0x1ca   : > { %v572_v0 = vmul.f32 %v571_v61, %v564_v45  ;;  %v612_v21 = vmul.f32 %v610_v12, %v608_v15 }
 0x1cc   : > { %v551_v49 = vpop.permute.xlu2 %550 }
 0x1cd   : > { %v555_v60 = vmul.f32 %v553_v53, %v551_v49  ;;  %v688_v49 = vperm.slane %v1249_v52, 5 }
 0x1cf   : > { %v560_v3 = vadd.f32 %v955_v58, %v555_v60 }
 0x1d1   : > { %v575_v13 = vadd.f32 %v573_v5, %v560_v3 }
 0x1d2   : > { %v617_v48 = vpop.permute.xlu1 %616 }
 0x1d3   : > { %v624_v37 = vmul.f32 %v623_v17, %v617_v48 }
 0x1d5   : > { %v604_v54 = vpop.permute.xlu2 %603 }
 0x1d6   : > { %v611_v29 = vmul.f32 %v610_v12, %v604_v54 }
 0x1dc   : > { %v1244_v51 = vpop.permute.xlu1 %694 }
 0x1de   : > { %v634_v8 = vpop.permute.xlu2 %633 }
 0x1df   : > { %v638_v30 = vmul.f32 %v636_v22, %v634_v8 }
 0x1e5   : > { %v546_v56 = vpop.permute.xlu1 %545 }
 0x1e6   : > { %v554_v59 = vmul.f32 %v553_v53, %v546_v56 }
 0x1e7   : > { %v656_v34 = vpop.permute.xlu2 %655 }
 0x1e8   : > { %v559_v62 = vadd.f32 %v955_v58, %v554_v59  ;;  %v663_v58 = vmul.f32 %v662_v9, %v656_v34 }
 0x1ea   : > { %v574_v4 = vadd.f32 %v572_v0, %v559_v62  ;;  %v703_v62 = vmul.f32 %v701_v57, %v1234_v27 }
 0x1ec   : > { %v587_v16 = vadd.f32 %v585_v7, %v574_v4  ;;  %v708_v4 = vpop.permute.xlu0 %707 }
 0x1ed   : > { %v715_v27 = vmul.f32 %v714_v47, %v708_v4 }
 0x1ee   : > { %v582_v11 = vpop.permute.xlu1 %581  ;;  %v600_v24 = vadd.f32 %v598_v20, %v587_v16 }
 0x1ef   : > { %v586_v14 = vmul.f32 %v584_v63, %v582_v11  ;;  %v702_v11 = vmul.f32 %v701_v57, %v1244_v51 }
 0x1f0   : > { %v613_v35 = vadd.f32 %v611_v29, %v600_v24  ;;  %v686_v54 = vpop.permute.xlu2 %685 }
 0x1f1   : > { %v588_v19 = vadd.f32 %v586_v14, %v575_v13  ;;  %v690_v59 = vmul.f32 %v688_v49, %v686_v54  ;;  %v727_v13 = vperm.slane %v1255_v55, 6 }
 0x1f2   : > { %v626_v41 = vadd.f32 %v624_v37, %v613_v35 }
 0x1f3   : > { %v601_v23 = vadd.f32 %v599_v18, %v588_v19  ;;  %v729_v18 = vmul.f32 %v727_v13, %v1236_v43  ;;  %v753_v19 = vperm.slane %v1255_v55, 7 }
 0x1f4   : > { %v738_v16 = vpop.permute.xlu0 %737 }
 0x1f5   : > { %v614_v28 = vadd.f32 %v612_v21, %v601_v23  ;;  %v728_v21 = vmul.f32 %v727_v13, %v1240_v46 }
 0x1f7   : > { %v630_v31 = vpop.permute.xlu1 %629  ;;  %v627_v32 = vadd.f32 %v625_v25, %v614_v28 }
 0x1f8   : > { %v637_v38 = vmul.f32 %v636_v22, %v630_v31  ;;  %v742_v22 = vmul.f32 %v740_v44, %v738_v16 }
 0x1f9   : > { %v640_v36 = vadd.f32 %v638_v30, %v627_v32  ;;  %v734_v7 = vpop.permute.xlu2 %733 }
 0x1fa   : > { %v639_v1 = vadd.f32 %v637_v38, %v626_v41  ;;  %v741_v26 = vmul.f32 %v740_v44, %v734_v7 }
 0x1fb   : > { %v653_v39 = vadd.f32 %v651_v33, %v640_v36 }
 0x1fc   : > { %v652_v56 = vadd.f32 %v650_v42, %v639_v1 }
 0x1fe   : > { %v665_v61 = vadd.f32 %v663_v58, %v652_v56 }
 0x200   : > { %v660_v45 = vpop.permute.xlu1 %659  ;;  %v678_v5 = vadd.f32 %v676_v50, %v665_v61 }
 0x201   : > { %v664_v53 = vmul.f32 %v662_v9, %v660_v45  ;;  %v751_v51 = vpop.permute.xlu2 %750 }
 0x202   : > { %v755_v52 = vmul.f32 %v753_v19, %v751_v51 }
 0x203   : > { %v666_v48 = vadd.f32 %v664_v53, %v653_v39 }
 0x205   : > { %v679_v60 = vadd.f32 %v677_v40, %v666_v48 }
 0x207   : > { %v692_v63 = vadd.f32 %v690_v59, %v679_v60 }
 0x209   : > { %v682_v0 = vpop.permute.xlu1 %681  ;;  %v705_v3 = vadd.f32 %v703_v62, %v692_v63 }
 0x20a   : > { %v689_v6 = vmul.f32 %v688_v49, %v682_v0 }
 0x20c   : > { %v691_v8 = vadd.f32 %v689_v6, %v678_v5 }
 0x20e   : > { %v704_v12 = vadd.f32 %v702_v11, %v691_v8 }
 0x210   : > { %v717_v17 = vadd.f32 %v715_v27, %v704_v12 }
 0x212   : > { %v712_v14 = vpop.permute.xlu1 %711  ;;  %v730_v24 = vadd.f32 %v728_v21, %v717_v17 }
 0x213   : > { %v716_v15 = vmul.f32 %v714_v47, %v712_v14 }
 0x214   : > { %v743_v46 = vadd.f32 %v741_v26, %v730_v24 }
 0x215   : > { %v718_v20 = vadd.f32 %v716_v15, %v705_v3 }
 0x217   : > { %v731_v23 = vadd.f32 %v729_v18, %v718_v20 }
 0x219   : > { %v744_v25 = vadd.f32 %v742_v22, %v731_v23 }
 0x21b   : > { %v757_v43 = vadd.f32 %v755_v52, %v744_v25  ;;  %v747_v28 = vpop.permute.xlu1 %746 }
 0x21c   : > { %v754_v55 = vmul.f32 %v753_v19, %v747_v28 }
 0x21d   : > { %762 = vst.msk [vmem:[%s352_s12 + $0x8] sm:$0xff] %vm760_vm2, %v757_v43 }
 0x21e   : > { %v756_v29 = vadd.f32 %v754_v55, %v743_v46 }
 0x220   : > { %v758_v30 = vsel %vm363_vm1, 0.0, %v756_v29 }
 0x221   : > { %761 = vst.msk [vmem:[%s352_s12] sm:$0xff] %vm760_vm2, %v758_v30 }
 0x222   : > { %983 = shalt.err (!%p980_p3)
}
 0x223   : > { %s1028_s26 = smov 128   ;;  %s1029_s12 = smov 8  }
 0x224   : > { %855 = dma.vmem_to_hbm [thread:$0]  (%p1123_p5), %s777_s17, 256, %s779_s18, %s764_s20, %s1028_s26, %s1028_s26, %s1029_s12  }
 0x225 PF: > { %p861_p4 = scmp.ge.s32.totalorder %s1018_s16, 2  ;;  %s793_s27 = sand.u32 1, %s1006_s13  }
 0x226   : > { %s794_s28 = scalar_lea.sflag [#allocation3], %s793_s27 }
 0x227   : > { %p858_p7 = pnand %p861_p4, %p1127_p6 }
 0x229   : > { %p859_p8 = pneg %p858_p7 }
 0x22b   : > { %1001 = dma.done.wait (%p859_p8), %s794_s28, 256  }
 0x22c   : > { %1003 = vsyncadd (%p859_p8), %s794_s28, 4294967040  ;;  %p20_p9 = scmp.ge.s32.totalorder %s1110_s19, 4   ;;  %s1328_s13 = smov %s1010_s14 }
 0x22d   : > { %s1329_s14 = smov %s1014_s15  ;;  %s1330_s15 = smov %s1121_s22 }
 0x22e   : > { %s1331_s16 = smov %s1110_s19  ;;  %22 = sbr.rel (!%p20_p9) target bundleno = 3 (0x3), region = 95 }
 0x233   :  { %800 = vsyncpa [#allocation3], 1 }
 0x234   :  { %802 = vsyncpa [#allocation3 + $0x1], 1 }

</bundles_post_ra>
